<compile_context>
chip_gen: v7x
topology: tpu7x:2x2x1
jax: 0.10.0
libtpu: 0.0.40
codegen_flags: <defaults>
</compile_context>

<pallas_src>
import numpy as np
import jax
import jax.numpy as jnp
from jax.experimental import pallas as pl
from jax.experimental.pallas import tpu as pltpu


# -----------------------------------------------------------------------------
# Weight-slab packing (done once, outside the per-call path).
# -----------------------------------------------------------------------------
_LANES = 128


def _round_up(x, m):
    return (x + m - 1) // m * m


def _pack_slab(named_arrays):
    """Pack 2D f32 arrays into one zero-padded [R, 128] slab (8-aligned rows)."""
    offs = {}
    row = 0
    for name, a in named_arrays:
        offs[name] = row
        row = _round_up(row + a.shape[0], 8)
    total_rows = _round_up(row, 8)
    slab = jnp.zeros((total_rows, _LANES), jnp.float32)
    for name, a in named_arrays:
        r, c = a.shape
        slab = slab.at[offs[name]:offs[name] + r, 0:c].set(a.astype(jnp.float32))
    return slab, offs


def prepare_fused(params):
    """One-time preparation: projected embedding table + packed weight slab."""
    w_ih0, w_hh0, b0 = params["rnn0"]
    # Layer-0 input projection folded through the embedding gather.
    table0 = jnp.dot(params["embed"], w_ih0, preferred_element_type=jnp.float32) + b0

    named = [("w_hh0", w_hh0)]
    for i, layer in enumerate(("out1", "out2", "out3", "out4"), start=1):
        wi, wh, bb = params[layer]
        named.extend([(f"w_ih{i}", wi), (f"w_hh{i}", wh), (f"b{i}", bb)])
    slab, offs = _pack_slab(named)

    dims = (
        params["rnn0"][1].shape[0],   # H0
        params["out1"][1].shape[0],   # 100
        params["out2"][1].shape[0],   # 20
        params["out3"][1].shape[0],   # 5
        params["out4"][1].shape[0],   # 1
    )
    return table0, slab, offs, dims


# -----------------------------------------------------------------------------
# Fused kernel: all five RNN layers in a single, gridless invocation.
# -----------------------------------------------------------------------------
def _make_kernel(B, S, dims, offs):
    H0, H1, H2, H3, H4 = dims
    f32 = jnp.float32

    def kernel(xp0_ref, slab_ref, out_ref):
        def w(name, r, c):
            o = offs[name]
            return slab_ref[o:o + r, 0:c]

        def dot(a, b_):
            return jnp.dot(a, b_, preferred_element_type=f32)

        xp0 = xp0_ref[...]                        # [B*S, H0] batch-major, bias folded

        # ---- layer 0: nn.RNN(E, H0, batch_first=True) -> recurrence over S ----
        # Independent chain per batch element; inputs/outputs stay batch-major 2D.
        w_hh0 = w("w_hh0", H0, H0)
        y_blocks = []
        for b in range(B):
            xb = xp0[b * S:(b + 1) * S]           # [S, H0] contiguous static slice
            h = jnp.tanh(xb[0:1])                 # h0 == 0 -> no recurrent matmul
            rows = [h]
            for s in range(1, S):
                h = jnp.tanh(xb[s:s + 1] + dot(h, w_hh0))
                rows.append(h)
            y_blocks.append(jnp.concatenate(rows, axis=0))
        y = jnp.concatenate(y_blocks, axis=0)     # [B*S, H0]
        # Dropout is identity in eval mode.
        # TODO(synk): training-mode dropout randomness is not reproduced.

        # ---- layers 1..3: nn.RNN(., .) batch_first=False -> recurrence over B --
        for (wi, wh, bb, d_in, d_out) in (
            ("w_ih1", "w_hh1", "b1", H0, H1),
            ("w_ih2", "w_hh2", "b2", H1, H2),
            ("w_ih3", "w_hh3", "b3", H2, H3),
        ):
            # Hoisted input projection + bias: one matmul over all B*S rows.
            xp = dot(y, w(wi, d_in, d_out)) + w(bb, 1, d_out)      # [B*S, d_out]
            w_hh = w(wh, d_out, d_out)
            h = jnp.tanh(xp[0:S])                                  # h0 == 0 skip
            blocks = [h]
            for b in range(1, B):
                h = jnp.tanh(xp[b * S:(b + 1) * S] + dot(h, w_hh))
                blocks.append(h)
            y = jnp.concatenate(blocks, axis=0)

        # ---- layer 4: nn.RNN(5, 1) -> 1x1 recurrent weight == VPU scalar mult --
        xp = dot(y, w("w_ih4", H3, H4)) + w("b4", 1, H4)           # [B*S, 1]
        w_hh4 = w("w_hh4", 1, 1)                                   # [1, 1]
        h = jnp.tanh(xp[0:S])
        blocks = [h]
        for b in range(1, B):
            h = jnp.tanh(xp[b * S:(b + 1) * S] + h * w_hh4)
            blocks.append(h)
        out_ref[...] = jnp.concatenate(blocks, axis=0)             # single store

    return kernel


def make_learn_forward(dims, offs, B, S):
    kernel = _make_kernel(B, S, dims, offs)
    H4 = dims[-1]

    @jax.jit
    def forward(table0, slab, x_idx):
        # Batch-major gather of the pre-projected layer-0 input:
        # xp0[b*S+s] = embed[x[b,s]] @ W_ih0 + b0.
        # (jnp.take clips OOB indices; nn.Embedding would raise — inputs in range.)
        xp0 = jnp.take(table0, x_idx.reshape(-1), axis=0)          # [B*S, H0]
        out2d = pl.pallas_call(
            kernel,
            out_shape=jax.ShapeDtypeStruct((B * S, H4), jnp.float32),
            in_specs=[pl.BlockSpec(memory_space=pltpu.MemorySpace.VMEM)] * 2,
            out_specs=pl.BlockSpec(memory_space=pltpu.MemorySpace.VMEM),
        )(xp0, slab)
        return out2d.reshape(B, S, H4)

    return forward


# -----------------------------------------------------------------------------
# Pure-JAX reference (same math, lax.scan per layer) for the correctness check.
# -----------------------------------------------------------------------------
def _rnn_layer_ref(x_tmajor, w_ih, w_hh, b):
    def step(h, x_t):
        h_new = jnp.tanh(x_t @ w_ih + h @ w_hh + b)
        return h_new, h_new

    h0 = jnp.zeros((x_tmajor.shape[1], w_hh.shape[0]), jnp.float32)
    _, ys = jax.lax.scan(step, h0, x_tmajor)
    return ys


def learn_forward_ref(params, x_idx):
    h = jnp.take(params["embed"], x_idx, axis=0)          # [B, S, E]
    h = jnp.transpose(h, (1, 0, 2))                       # [S, B, E]
    h = _rnn_layer_ref(h, *params["rnn0"])                # [S, B, H]
    h = jnp.transpose(h, (1, 0, 2))                       # [B, S, H]
    for name in ("out1", "out2", "out3", "out4"):         # recur over dim 0 = B
        h = _rnn_layer_ref(h, *params[name])
    return h                                              # [B, S, 1]


# -----------------------------------------------------------------------------
# Parameter init (deterministic; W stored pre-transposed as [D_in, H] / [H, H]).
# -----------------------------------------------------------------------------
def _init_rnn_params(key, d_in, h):
    k1, k2, k3, k4 = jax.random.split(key, 4)
    bound = 1.0 / np.sqrt(h)
    w_ih = jax.random.uniform(k1, (d_in, h), jnp.float32, -bound, bound)
    w_hh = jax.random.uniform(k2, (h, h), jnp.float32, -bound, bound)
    b_ih = jax.random.uniform(k3, (h,), jnp.float32, -bound, bound)
    b_hh = jax.random.uniform(k4, (h,), jnp.float32, -bound, bound)
    return w_ih, w_hh, (b_ih + b_hh).reshape(1, h)


def init_params(key, word_size, input_size, hidden_size):
    keys = jax.random.split(key, 6)
    return {
        "embed": jax.random.normal(keys[0], (word_size + 1, input_size), jnp.float32),
        "rnn0": _init_rnn_params(keys[1], input_size, hidden_size),
        "out1": _init_rnn_params(keys[2], hidden_size, 100),
        "out2": _init_rnn_params(keys[3], 100, 20),
        "out3": _init_rnn_params(keys[4], 20, 5),
        "out4": _init_rnn_params(keys[5], 5, 1),
    }


if __name__ == "__main__":
    word_size, input_size, hidden_size = 50, 32, 32
    B, S = 2, 8

    key = jax.random.PRNGKey(0)
    k_params, k_idx = jax.random.split(key)
    params = init_params(k_params, word_size, input_size, hidden_size)
    x_idx = jax.random.randint(k_idx, (B, S), 0, word_size + 1, dtype=jnp.int32)

    # One-time packing (projected embedding table + single weight slab).
    table0, slab, offs, dims = prepare_fused(params)
    forward = make_learn_forward(dims, offs, B, S)

    out = jax.block_until_ready(forward(table0, slab, x_idx))

    ref = learn_forward_ref(params, x_idx)
    assert out.shape == (B, S, 1), out.shape
    np.testing.assert_allclose(np.asarray(out), np.asarray(ref), rtol=1e-4, atol=1e-4)

    print("KERNEL_OK")
</pallas_src>

<mosaic_0001>
module attributes {stable_mosaic.version = 11 : i64} {
  func.func @kernel(%arg0: memref<16x32xf32, #tpu.memory_space<vmem>>, %arg1: memref<376x128xf32, #tpu.memory_space<vmem>>, %arg2: memref<16x1xf32, #tpu.memory_space<vmem>>) attributes {dimension_semantics = [], scalar_prefetch = 0 : i64, scratch_operands = 0 : i64, tpu.core_type = #tpu.core_type<tc>} {
    %c0 = arith.constant 0 : index
    %c0_0 = arith.constant 0 : index
    %0 = vector.load %arg0[%c0, %c0_0] : memref<16x32xf32, #tpu.memory_space<vmem>>, vector<16x32xf32>
    %c0_1 = arith.constant 0 : index
    %c0_2 = arith.constant 0 : index
    %1 = vector.load %arg1[%c0_1, %c0_2] : memref<376x128xf32, #tpu.memory_space<vmem>>, vector<32x32xf32>
    %2 = vector.extract_strided_slice %0 {offsets = [0, 0], sizes = [8, 32], strides = [1, 1]} : vector<16x32xf32> to vector<8x32xf32>
    %3 = vector.extract_strided_slice %2 {offsets = [0, 0], sizes = [1, 32], strides = [1, 1]} : vector<8x32xf32> to vector<1x32xf32>
    %4 = math.tanh %3 : vector<1x32xf32>
    %5 = vector.extract_strided_slice %2 {offsets = [1, 0], sizes = [1, 32], strides = [1, 1]} : vector<8x32xf32> to vector<1x32xf32>
    %cst = arith.constant dense<0.000000e+00> : vector<1x32xf32>
    %6 = tpu.matmul %4, %1, %cst {dimension_numbers = #tpu.dot_dimension_numbers<[1], [0], [0], [1], [0, 0, 1, 1], [], []>} : vector<1x32xf32>, vector<32x32xf32>, vector<1x32xf32> -> vector<1x32xf32>
    %7 = arith.addf %5, %6 : vector<1x32xf32>
    %8 = math.tanh %7 : vector<1x32xf32>
    %9 = vector.extract_strided_slice %2 {offsets = [2, 0], sizes = [1, 32], strides = [1, 1]} : vector<8x32xf32> to vector<1x32xf32>
    %cst_3 = arith.constant dense<0.000000e+00> : vector<1x32xf32>
    %10 = tpu.matmul %8, %1, %cst_3 {dimension_numbers = #tpu.dot_dimension_numbers<[1], [0], [0], [1], [0, 0, 1, 1], [], []>} : vector<1x32xf32>, vector<32x32xf32>, vector<1x32xf32> -> vector<1x32xf32>
    %11 = arith.addf %9, %10 : vector<1x32xf32>
    %12 = math.tanh %11 : vector<1x32xf32>
    %13 = vector.extract_strided_slice %2 {offsets = [3, 0], sizes = [1, 32], strides = [1, 1]} : vector<8x32xf32> to vector<1x32xf32>
    %cst_4 = arith.constant dense<0.000000e+00> : vector<1x32xf32>
    %14 = tpu.matmul %12, %1, %cst_4 {dimension_numbers = #tpu.dot_dimension_numbers<[1], [0], [0], [1], [0, 0, 1, 1], [], []>} : vector<1x32xf32>, vector<32x32xf32>, vector<1x32xf32> -> vector<1x32xf32>
    %15 = arith.addf %13, %14 : vector<1x32xf32>
    %16 = math.tanh %15 : vector<1x32xf32>
    %17 = vector.extract_strided_slice %2 {offsets = [4, 0], sizes = [1, 32], strides = [1, 1]} : vector<8x32xf32> to vector<1x32xf32>
    %cst_5 = arith.constant dense<0.000000e+00> : vector<1x32xf32>
    %18 = tpu.matmul %16, %1, %cst_5 {dimension_numbers = #tpu.dot_dimension_numbers<[1], [0], [0], [1], [0, 0, 1, 1], [], []>} : vector<1x32xf32>, vector<32x32xf32>, vector<1x32xf32> -> vector<1x32xf32>
    %19 = arith.addf %17, %18 : vector<1x32xf32>
    %20 = math.tanh %19 : vector<1x32xf32>
    %21 = vector.extract_strided_slice %2 {offsets = [5, 0], sizes = [1, 32], strides = [1, 1]} : vector<8x32xf32> to vector<1x32xf32>
    %cst_6 = arith.constant dense<0.000000e+00> : vector<1x32xf32>
    %22 = tpu.matmul %20, %1, %cst_6 {dimension_numbers = #tpu.dot_dimension_numbers<[1], [0], [0], [1], [0, 0, 1, 1], [], []>} : vector<1x32xf32>, vector<32x32xf32>, vector<1x32xf32> -> vector<1x32xf32>
    %23 = arith.addf %21, %22 : vector<1x32xf32>
    %24 = math.tanh %23 : vector<1x32xf32>
    %25 = vector.extract_strided_slice %2 {offsets = [6, 0], sizes = [1, 32], strides = [1, 1]} : vector<8x32xf32> to vector<1x32xf32>
    %cst_7 = arith.constant dense<0.000000e+00> : vector<1x32xf32>
    %26 = tpu.matmul %24, %1, %cst_7 {dimension_numbers = #tpu.dot_dimension_numbers<[1], [0], [0], [1], [0, 0, 1, 1], [], []>} : vector<1x32xf32>, vector<32x32xf32>, vector<1x32xf32> -> vector<1x32xf32>
    %27 = arith.addf %25, %26 : vector<1x32xf32>
    %28 = math.tanh %27 : vector<1x32xf32>
    %29 = vector.extract_strided_slice %2 {offsets = [7, 0], sizes = [1, 32], strides = [1, 1]} : vector<8x32xf32> to vector<1x32xf32>
    %cst_8 = arith.constant dense<0.000000e+00> : vector<1x32xf32>
    %30 = tpu.matmul %28, %1, %cst_8 {dimension_numbers = #tpu.dot_dimension_numbers<[1], [0], [0], [1], [0, 0, 1, 1], [], []>} : vector<1x32xf32>, vector<32x32xf32>, vector<1x32xf32> -> vector<1x32xf32>
    %31 = arith.addf %29, %30 : vector<1x32xf32>
    %32 = math.tanh %31 : vector<1x32xf32>
    %33 = tpu.concatenate %4, %8, %12, %16, %20, %24, %28, %32 in 0 : vector<1x32xf32>, vector<1x32xf32>, vector<1x32xf32>, vector<1x32xf32>, vector<1x32xf32>, vector<1x32xf32>, vector<1x32xf32>, vector<1x32xf32> -> vector<8x32xf32>
    %34 = vector.extract_strided_slice %0 {offsets = [8, 0], sizes = [8, 32], strides = [1, 1]} : vector<16x32xf32> to vector<8x32xf32>
    %35 = vector.extract_strided_slice %34 {offsets = [0, 0], sizes = [1, 32], strides = [1, 1]} : vector<8x32xf32> to vector<1x32xf32>
    %36 = math.tanh %35 : vector<1x32xf32>
    %37 = vector.extract_strided_slice %34 {offsets = [1, 0], sizes = [1, 32], strides = [1, 1]} : vector<8x32xf32> to vector<1x32xf32>
    %cst_9 = arith.constant dense<0.000000e+00> : vector<1x32xf32>
    %38 = tpu.matmul %36, %1, %cst_9 {dimension_numbers = #tpu.dot_dimension_numbers<[1], [0], [0], [1], [0, 0, 1, 1], [], []>} : vector<1x32xf32>, vector<32x32xf32>, vector<1x32xf32> -> vector<1x32xf32>
    %39 = arith.addf %37, %38 : vector<1x32xf32>
    %40 = math.tanh %39 : vector<1x32xf32>
    %41 = vector.extract_strided_slice %34 {offsets = [2, 0], sizes = [1, 32], strides = [1, 1]} : vector<8x32xf32> to vector<1x32xf32>
    %cst_10 = arith.constant dense<0.000000e+00> : vector<1x32xf32>
    %42 = tpu.matmul %40, %1, %cst_10 {dimension_numbers = #tpu.dot_dimension_numbers<[1], [0], [0], [1], [0, 0, 1, 1], [], []>} : vector<1x32xf32>, vector<32x32xf32>, vector<1x32xf32> -> vector<1x32xf32>
    %43 = arith.addf %41, %42 : vector<1x32xf32>
    %44 = math.tanh %43 : vector<1x32xf32>
    %45 = vector.extract_strided_slice %34 {offsets = [3, 0], sizes = [1, 32], strides = [1, 1]} : vector<8x32xf32> to vector<1x32xf32>
    %cst_11 = arith.constant dense<0.000000e+00> : vector<1x32xf32>
    %46 = tpu.matmul %44, %1, %cst_11 {dimension_numbers = #tpu.dot_dimension_numbers<[1], [0], [0], [1], [0, 0, 1, 1], [], []>} : vector<1x32xf32>, vector<32x32xf32>, vector<1x32xf32> -> vector<1x32xf32>
    %47 = arith.addf %45, %46 : vector<1x32xf32>
    %48 = math.tanh %47 : vector<1x32xf32>
    %49 = vector.extract_strided_slice %34 {offsets = [4, 0], sizes = [1, 32], strides = [1, 1]} : vector<8x32xf32> to vector<1x32xf32>
    %cst_12 = arith.constant dense<0.000000e+00> : vector<1x32xf32>
    %50 = tpu.matmul %48, %1, %cst_12 {dimension_numbers = #tpu.dot_dimension_numbers<[1], [0], [0], [1], [0, 0, 1, 1], [], []>} : vector<1x32xf32>, vector<32x32xf32>, vector<1x32xf32> -> vector<1x32xf32>
    %51 = arith.addf %49, %50 : vector<1x32xf32>
    %52 = math.tanh %51 : vector<1x32xf32>
    %53 = vector.extract_strided_slice %34 {offsets = [5, 0], sizes = [1, 32], strides = [1, 1]} : vector<8x32xf32> to vector<1x32xf32>
    %cst_13 = arith.constant dense<0.000000e+00> : vector<1x32xf32>
    %54 = tpu.matmul %52, %1, %cst_13 {dimension_numbers = #tpu.dot_dimension_numbers<[1], [0], [0], [1], [0, 0, 1, 1], [], []>} : vector<1x32xf32>, vector<32x32xf32>, vector<1x32xf32> -> vector<1x32xf32>
    %55 = arith.addf %53, %54 : vector<1x32xf32>
    %56 = math.tanh %55 : vector<1x32xf32>
    %57 = vector.extract_strided_slice %34 {offsets = [6, 0], sizes = [1, 32], strides = [1, 1]} : vector<8x32xf32> to vector<1x32xf32>
    %cst_14 = arith.constant dense<0.000000e+00> : vector<1x32xf32>
    %58 = tpu.matmul %56, %1, %cst_14 {dimension_numbers = #tpu.dot_dimension_numbers<[1], [0], [0], [1], [0, 0, 1, 1], [], []>} : vector<1x32xf32>, vector<32x32xf32>, vector<1x32xf32> -> vector<1x32xf32>
    %59 = arith.addf %57, %58 : vector<1x32xf32>
    %60 = math.tanh %59 : vector<1x32xf32>
    %61 = vector.extract_strided_slice %34 {offsets = [7, 0], sizes = [1, 32], strides = [1, 1]} : vector<8x32xf32> to vector<1x32xf32>
    %cst_15 = arith.constant dense<0.000000e+00> : vector<1x32xf32>
    %62 = tpu.matmul %60, %1, %cst_15 {dimension_numbers = #tpu.dot_dimension_numbers<[1], [0], [0], [1], [0, 0, 1, 1], [], []>} : vector<1x32xf32>, vector<32x32xf32>, vector<1x32xf32> -> vector<1x32xf32>
    %63 = arith.addf %61, %62 : vector<1x32xf32>
    %64 = math.tanh %63 : vector<1x32xf32>
    %65 = tpu.concatenate %36, %40, %44, %48, %52, %56, %60, %64 in 0 : vector<1x32xf32>, vector<1x32xf32>, vector<1x32xf32>, vector<1x32xf32>, vector<1x32xf32>, vector<1x32xf32>, vector<1x32xf32>, vector<1x32xf32> -> vector<8x32xf32>
    %66 = tpu.concatenate %33, %65 in 0 : vector<8x32xf32>, vector<8x32xf32> -> vector<16x32xf32>
    %c32 = arith.constant 32 : index
    %c0_16 = arith.constant 0 : index
    %67 = vector.load %arg1[%c32, %c0_16] : memref<376x128xf32, #tpu.memory_space<vmem>>, vector<32x100xf32>
    %cst_17 = arith.constant dense<0.000000e+00> : vector<16x100xf32>
    %68 = tpu.matmul %66, %67, %cst_17 {dimension_numbers = #tpu.dot_dimension_numbers<[1], [0], [0], [1], [0, 0, 1, 1], [], []>} : vector<16x32xf32>, vector<32x100xf32>, vector<16x100xf32> -> vector<16x100xf32>
    %c168 = arith.constant 168 : index
    %c0_18 = arith.constant 0 : index
    %69 = vector.load %arg1[%c168, %c0_18] : memref<376x128xf32, #tpu.memory_space<vmem>>, vector<1x100xf32>
    %70 = vector.broadcast %69 : vector<1x100xf32> to vector<16x100xf32>
    %71 = arith.addf %68, %70 : vector<16x100xf32>
    %c64 = arith.constant 64 : index
    %c0_19 = arith.constant 0 : index
    %72 = vector.load %arg1[%c64, %c0_19] : memref<376x128xf32, #tpu.memory_space<vmem>>, vector<100x100xf32>
    %73 = vector.extract_strided_slice %71 {offsets = [0, 0], sizes = [8, 100], strides = [1, 1]} : vector<16x100xf32> to vector<8x100xf32>
    %74 = math.tanh %73 : vector<8x100xf32>
    %75 = vector.extract_strided_slice %71 {offsets = [8, 0], sizes = [8, 100], strides = [1, 1]} : vector<16x100xf32> to vector<8x100xf32>
    %cst_20 = arith.constant dense<0.000000e+00> : vector<8x100xf32>
    %76 = tpu.matmul %74, %72, %cst_20 {dimension_numbers = #tpu.dot_dimension_numbers<[1], [0], [0], [1], [0, 0, 1, 1], [], []>} : vector<8x100xf32>, vector<100x100xf32>, vector<8x100xf32> -> vector<8x100xf32>
    %77 = arith.addf %75, %76 : vector<8x100xf32>
    %78 = math.tanh %77 : vector<8x100xf32>
    %79 = tpu.concatenate %74, %78 in 0 : vector<8x100xf32>, vector<8x100xf32> -> vector<16x100xf32>
    %c176 = arith.constant 176 : index
    %c0_21 = arith.constant 0 : index
    %80 = vector.load %arg1[%c176, %c0_21] : memref<376x128xf32, #tpu.memory_space<vmem>>, vector<100x20xf32>
    %cst_22 = arith.constant dense<0.000000e+00> : vector<16x20xf32>
    %81 = tpu.matmul %79, %80, %cst_22 {dimension_numbers = #tpu.dot_dimension_numbers<[1], [0], [0], [1], [0, 0, 1, 1], [], []>} : vector<16x100xf32>, vector<100x20xf32>, vector<16x20xf32> -> vector<16x20xf32>
    %c304 = arith.constant 304 : index
    %c0_23 = arith.constant 0 : index
    %82 = vector.load %arg1[%c304, %c0_23] : memref<376x128xf32, #tpu.memory_space<vmem>>, vector<1x20xf32>
    %83 = vector.broadcast %82 : vector<1x20xf32> to vector<16x20xf32>
    %84 = arith.addf %81, %83 : vector<16x20xf32>
    %c280 = arith.constant 280 : index
    %c0_24 = arith.constant 0 : index
    %85 = vector.load %arg1[%c280, %c0_24] : memref<376x128xf32, #tpu.memory_space<vmem>>, vector<20x20xf32>
    %86 = vector.extract_strided_slice %84 {offsets = [0, 0], sizes = [8, 20], strides = [1, 1]} : vector<16x20xf32> to vector<8x20xf32>
    %87 = math.tanh %86 : vector<8x20xf32>
    %88 = vector.extract_strided_slice %84 {offsets = [8, 0], sizes = [8, 20], strides = [1, 1]} : vector<16x20xf32> to vector<8x20xf32>
    %cst_25 = arith.constant dense<0.000000e+00> : vector<8x20xf32>
    %89 = tpu.matmul %87, %85, %cst_25 {dimension_numbers = #tpu.dot_dimension_numbers<[1], [0], [0], [1], [0, 0, 1, 1], [], []>} : vector<8x20xf32>, vector<20x20xf32>, vector<8x20xf32> -> vector<8x20xf32>
    %90 = arith.addf %88, %89 : vector<8x20xf32>
    %91 = math.tanh %90 : vector<8x20xf32>
    %92 = tpu.concatenate %87, %91 in 0 : vector<8x20xf32>, vector<8x20xf32> -> vector<16x20xf32>
    %c312 = arith.constant 312 : index
    %c0_26 = arith.constant 0 : index
    %93 = vector.load %arg1[%c312, %c0_26] : memref<376x128xf32, #tpu.memory_space<vmem>>, vector<20x5xf32>
    %cst_27 = arith.constant dense<0.000000e+00> : vector<16x5xf32>
    %94 = tpu.matmul %92, %93, %cst_27 {dimension_numbers = #tpu.dot_dimension_numbers<[1], [0], [0], [1], [0, 0, 1, 1], [], []>} : vector<16x20xf32>, vector<20x5xf32>, vector<16x5xf32> -> vector<16x5xf32>
    %c344 = arith.constant 344 : index
    %c0_28 = arith.constant 0 : index
    %95 = vector.load %arg1[%c344, %c0_28] : memref<376x128xf32, #tpu.memory_space<vmem>>, vector<1x5xf32>
    %96 = vector.broadcast %95 : vector<1x5xf32> to vector<16x5xf32>
    %97 = arith.addf %94, %96 : vector<16x5xf32>
    %c336 = arith.constant 336 : index
    %c0_29 = arith.constant 0 : index
    %98 = vector.load %arg1[%c336, %c0_29] : memref<376x128xf32, #tpu.memory_space<vmem>>, vector<5x5xf32>
    %99 = vector.extract_strided_slice %97 {offsets = [0, 0], sizes = [8, 5], strides = [1, 1]} : vector<16x5xf32> to vector<8x5xf32>
    %100 = math.tanh %99 : vector<8x5xf32>
    %101 = vector.extract_strided_slice %97 {offsets = [8, 0], sizes = [8, 5], strides = [1, 1]} : vector<16x5xf32> to vector<8x5xf32>
    %cst_30 = arith.constant dense<0.000000e+00> : vector<8x5xf32>
    %102 = tpu.matmul %100, %98, %cst_30 {dimension_numbers = #tpu.dot_dimension_numbers<[1], [0], [0], [1], [0, 0, 1, 1], [], []>} : vector<8x5xf32>, vector<5x5xf32>, vector<8x5xf32> -> vector<8x5xf32>
    %103 = arith.addf %101, %102 : vector<8x5xf32>
    %104 = math.tanh %103 : vector<8x5xf32>
    %105 = tpu.concatenate %100, %104 in 0 : vector<8x5xf32>, vector<8x5xf32> -> vector<16x5xf32>
    %c352 = arith.constant 352 : index
    %c0_31 = arith.constant 0 : index
    %106 = vector.load %arg1[%c352, %c0_31] : memref<376x128xf32, #tpu.memory_space<vmem>>, vector<5x1xf32>
    %cst_32 = arith.constant dense<0.000000e+00> : vector<16x1xf32>
    %107 = tpu.matmul %105, %106, %cst_32 {dimension_numbers = #tpu.dot_dimension_numbers<[1], [0], [0], [1], [0, 0, 1, 1], [], []>} : vector<16x5xf32>, vector<5x1xf32>, vector<16x1xf32> -> vector<16x1xf32>
    %c368 = arith.constant 368 : index
    %c0_33 = arith.constant 0 : index
    %108 = vector.load %arg1[%c368, %c0_33] : memref<376x128xf32, #tpu.memory_space<vmem>>, vector<1x1xf32>
    %109 = vector.broadcast %108 : vector<1x1xf32> to vector<16x1xf32>
    %110 = arith.addf %107, %109 : vector<16x1xf32>
    %c360 = arith.constant 360 : index
    %c0_34 = arith.constant 0 : index
    %111 = vector.load %arg1[%c360, %c0_34] : memref<376x128xf32, #tpu.memory_space<vmem>>, vector<1x1xf32>
    %112 = vector.extract_strided_slice %110 {offsets = [0, 0], sizes = [8, 1], strides = [1, 1]} : vector<16x1xf32> to vector<8x1xf32>
    %113 = math.tanh %112 : vector<8x1xf32>
    %114 = vector.extract_strided_slice %110 {offsets = [8, 0], sizes = [8, 1], strides = [1, 1]} : vector<16x1xf32> to vector<8x1xf32>
    %115 = vector.broadcast %111 : vector<1x1xf32> to vector<8x1xf32>
    %116 = arith.mulf %113, %115 : vector<8x1xf32>
    %117 = arith.addf %114, %116 : vector<8x1xf32>
    %118 = math.tanh %117 : vector<8x1xf32>
    %119 = tpu.concatenate %113, %118 in 0 : vector<8x1xf32>, vector<8x1xf32> -> vector<16x1xf32>
    %c0_35 = arith.constant 0 : index
    %c0_36 = arith.constant 0 : index
    %120 = vector.load %arg2[%c0_35, %c0_36] : memref<16x1xf32, #tpu.memory_space<vmem>>, vector<16x1xf32>
    tpu.vector_store %arg2[%c0_35, %c0_36], %119 {strides = array<i32>} : memref<16x1xf32, #tpu.memory_space<vmem>>, vector<16x1xf32>,
    return
  }
}

</mosaic_0001>

<bundles_post_ra>
// kernel: forward.1
= control target key start
LH: loop header
LB: loop body
LE: loop exit
PB: predicated region body
PF: predicated region fallthrough
CT: control target
= control target key end

     0   :  { %7 = vsyncpa [#allocation3], 0  ;;  %s2423_s9 = smov [#allocation2]   ;;  %s2637_s0 = inlined_call_operand.vmem [shape: f32[16,32], index: 0, kind: input, shape index: {}]   ;;  %s2638_s1 = inlined_call_operand.hbm [shape: f32[376,128], index: 1, kind: input, shape index: {}]   ;;  %s2639_s2 = inlined_call_operand.vmem [shape: f32[16,1], index: 2, kind: output, shape index: {}]  }
   0x1   :  { %s15_s10 = sshll.u32 %s2423_s9, 4  ;;  %s2399_s13 = scalar_lea.hbm %s2638_s1, 6016  ;;  %s16_s10 = int_to_ptr.vmem [resolvable:$true] %s15_s10 }
   0x2   :  { %p2400_p0 = scmp.ne.s32.totalorder %s2638_s1, %s2399_s13  ;;  %p2403_p1 = scmp.lt.u32.totalorder %s2399_s13, %s2638_s1 }
   0x4   :  { %p2405_p2 = pnand %p2403_p1, %p2400_p0 }
   0x6   :  { %2408 = shalt.err (!%p2405_p2)
}
   0x7   :  { %s2409_s18 = scalar_lea.vmem %s16_s10, 6016  ;;  %p2414_p4 = scmp.lt.s32.totalorder %s16_s10, %s16_s10 }
   0x8   :  { %p2410_p3 = scmp.ne.s32.totalorder %s16_s10, %s2409_s18  ;;  %p2415_p5 = scmp.lt.s32.totalorder %s2409_s18, %s2409_s18 }
   0xa   :  { %p2416_p6 = por %p2415_p5, %p2414_p4 }
   0xc   :  { %p2417_p7 = pnand %p2416_p6, %p2410_p3 }
   0xe   :  { %2420 = shalt.err (!%p2417_p7)
}
   0xf   :  { %s2424_s19 = smov 128   ;;  %s2425_s20 = smov 8  }
  0x10   :  { %21 = dma.hbm_to_vmem [thread:$0]  %s2638_s1, 6016, %s16_s10, [#allocation3], %s2424_s19, %s2424_s19, %s2425_s20  }
  0x11   :  { %2421 = dma.done.wait [#allocation3], 6016  }
  0x12   :  { %2422 = vsyncadd [#allocation3], 4294961280  ;;  %v2426_v0 = vmov 0.0|0.0   ;;  %vm2427_vm0 = vmmov 0   ;;  %v2428_v1 = vmov 0.0   ;;  %v27_v2 = vld [vmem:[#allocation2] sm:$0xff] }
  0x13   :  { %2204 = vmatprep.subr.bf16.mxu0 %v2426_v0  ;;  %1961 = vmatprep.mubr.msk.f32.mxu0 %vm2427_vm0, %v2428_v1  ;;  %v28_v3 = vld [vmem:[#allocation2 + $0x8] sm:$0xff]  ;;  %v29_v4 = vld [vmem:[#allocation2 + $0x10] sm:$0xff]  ;;  %v30_v6 = vld [vmem:[#allocation2 + $0x18] sm:$0xff]  ;;  %vm32_vm1 = vcmask 261120   ;;  %vm585_vm2 = vcmask 1040384   ;;  %vm587_vm3 = vcmask 1041408  }
  0x14   :  { %2210 = vmatprep.subr.bf16.mxu1 %v2426_v0  ;;  %1972 = vmatprep.mubr.msk.f32.mxu1 %vm2427_vm0, %v2428_v1  ;;  %v2462_v5 = vpack.c.bf16 %v28_v3, %v27_v2  ;;  %v2467_v7 = vld [vmem:[%s2637_s0] sm:$0xff]  ;;  %v2471_v8 = vpack.c.bf16 %v30_v6, %v29_v4  ;;  %vm589_vm4 = vcmask 1042432   ;;  %vm591_vm5 = vcmask 1043456   ;;  %v2527_v42 = vld [vmem:[%s2637_s0 + $0x8] sm:$0xff] }
  0x15   :  { %2351 = vtanh.f32 %v2467_v7  ;;  %vm593_vm6 = vcmask 1044480   ;;  %vm595_vm7 = vcmask 1045504   ;;  %vm597_vm8 = vcmask 1046528  }
  0x16   :  { %2206 = vmatpush3.bf16.msra.mxu0 %v2462_v5  ;;  %2212 = vmatpush3.bf16.msra.mxu1 %v2462_v5  ;;  %vm1263_vm9 = vcmask 818176   ;;  %vm1445_vm10 = vcmask 162816   ;;  %vm1615_vm11 = vcmask 39936   ;;  %vm1790_vm12 = vcmask 7168  }
  0x17   :  { %2207 = vmatprep.subr.bf16.mxu0 %v2426_v0  ;;  %2213 = vmatprep.subr.bf16.mxu1 %v2426_v0 }
  0x1a   :  { %2209 = vmatpush3.bf16.msra.mxu0 %v2471_v8  ;;  %2215 = vmatpush3.bf16.msra.mxu1 %v2471_v8 }
  0x1b   :  { %2216 = vmatprep.subr.bf16.mxu0 %v2426_v0  ;;  %2222 = vmatprep.subr.bf16.mxu1 %v2426_v0 }
  0x1f   :  { %v2352_v9 = vpop.eup %2351 }
  0x20   :  { %1962 = vmatmul.mubr.msk.f32.vlgmr.msra.gmra.mrb[0].mxu0 %vm32_vm1, %v2352_v9 }
  0x21   :  { %2218 = vmatpush3.bf16.msra.mxu0 %v2462_v5  ;;  %1983 = vmatprep.mubr.msk.f32.mxu0 %vm2427_vm0, %v2428_v1 }
  0x22   :  { %2219 = vmatprep.subr.bf16.mxu0 %v2426_v0 }
  0x25   :  { %2221 = vmatpush3.bf16.msra.mxu0 %v2471_v8 }
  0x26   :  { %2228 = vmatprep.subr.bf16.mxu0 %v2426_v0 }
  0xf3   :  { %v102_v10 = vpop.f32.mrb[0].mxu0 }
  0xf4   :  { %v107_v11 = vrot.slane %v102_v10, 7  ;;  %v1963_v12 = vpop.f32.mrb[1].mxu0 }
  0xf6   :  { %v109_v13 = vadd.f32 %v107_v11, %v2467_v7 }
  0xf8   :  { %2353 = vtanh.f32 %v109_v13 }
 0x102   :  { %v2354_v14 = vpop.eup %2353 }
 0x103   :  { %v112_v15 = vrot.slane %v2354_v14, 1  ;;  %v586_v21 = vsel %vm585_vm2, %v2352_v9, %v2354_v14 }
 0x105   :  { %1973 = vmatmul.mubr.msk.f32.vlgmr.msra.gmra.mrb[0].mxu1 %vm32_vm1, %v112_v15 }
 0x106   :  { %2224 = vmatpush3.bf16.msra.mxu1 %v2462_v5  ;;  %1994 = vmatprep.mubr.msk.f32.mxu1 %vm2427_vm0, %v2428_v1 }
 0x107   :  { %2225 = vmatprep.subr.bf16.mxu1 %v2426_v0 }
 0x10a   :  { %2227 = vmatpush3.bf16.msra.mxu1 %v2471_v8 }
 0x10b   :  { %2234 = vmatprep.subr.bf16.mxu1 %v2426_v0 }
 0x1d8   :  { %v181_v16 = vpop.f32.mrb[0].mxu1 }
 0x1d9   :  { %v186_v17 = vrot.slane %v181_v16, 6  ;;  %v1974_v18 = vpop.f32.mrb[1].mxu1 }
 0x1db   :  { %v188_v19 = vadd.f32 %v186_v17, %v2467_v7 }
 0x1dd   :  { %2355 = vtanh.f32 %v188_v19 }
 0x1e7   :  { %v2356_v20 = vpop.eup %2355 }
 0x1e8   :  { %v191_v22 = vrot.slane %v2356_v20, 2  ;;  %v588_v23 = vsel %vm587_vm3, %v586_v21, %v2356_v20 }
 0x1ea   :  { %1984 = vmatmul.mubr.msk.f32.vlgmr.msra.gmra.mrb[2].mxu0 %vm32_vm1, %v191_v22 }
 0x1eb   :  { %2230 = vmatpush3.bf16.msra.mxu0 %v2462_v5  ;;  %2005 = vmatprep.mubr.msk.f32.mxu0 %vm2427_vm0, %v2428_v1 }
 0x1ec   :  { %2231 = vmatprep.subr.bf16.mxu0 %v2426_v0 }
 0x1ef   :  { %2233 = vmatpush3.bf16.msra.mxu0 %v2471_v8 }
 0x1f0   :  { %2240 = vmatprep.subr.bf16.mxu0 %v2426_v0 }
 0x2bd   :  { %v260_v24 = vpop.f32.mrb[2].mxu0 }
 0x2be   :  { %v265_v25 = vrot.slane %v260_v24, 5  ;;  %v1985_v26 = vpop.f32.mrb[3].mxu0 }
 0x2c0   :  { %v267_v27 = vadd.f32 %v265_v25, %v2467_v7 }
 0x2c2   :  { %2357 = vtanh.f32 %v267_v27 }
 0x2cc   :  { %v2358_v28 = vpop.eup %2357 }
 0x2cd   :  { %v270_v29 = vrot.slane %v2358_v28, 3  ;;  %v590_v30 = vsel %vm589_vm4, %v588_v23, %v2358_v28 }
 0x2cf   :  { %1995 = vmatmul.mubr.msk.f32.vlgmr.msra.gmra.mrb[2].mxu1 %vm32_vm1, %v270_v29 }
 0x2d0   :  { %2236 = vmatpush3.bf16.msra.mxu1 %v2462_v5  ;;  %2016 = vmatprep.mubr.msk.f32.mxu1 %vm2427_vm0, %v2428_v1 }
 0x2d1   :  { %2237 = vmatprep.subr.bf16.mxu1 %v2426_v0 }
 0x2d4   :  { %2239 = vmatpush3.bf16.msra.mxu1 %v2471_v8 }
 0x2d5   :  { %2246 = vmatprep.subr.bf16.mxu1 %v2426_v0 }
 0x3a2   :  { %v339_v31 = vpop.f32.mrb[2].mxu1 }
 0x3a3   :  { %v344_v32 = vrot.slane %v339_v31, 4  ;;  %v1996_v33 = vpop.f32.mrb[3].mxu1 }
 0x3a5   :  { %v346_v34 = vadd.f32 %v344_v32, %v2467_v7 }
 0x3a7   :  { %2359 = vtanh.f32 %v346_v34 }
 0x3b1   :  { %v2360_v35 = vpop.eup %2359 }
 0x3b2   :  { %v349_v36 = vrot.slane %v2360_v35, 4  ;;  %v592_v37 = vsel %vm591_vm5, %v590_v30, %v2360_v35 }
 0x3b4   :  { %2006 = vmatmul.mubr.msk.f32.vlgmr.msra.gmra.mrb[4].mxu0 %vm32_vm1, %v349_v36 }
 0x3b5   :  { %2242 = vmatpush3.bf16.msra.mxu0 %v2462_v5  ;;  %2027 = vmatprep.mubr.msk.f32.mxu0 %vm2427_vm0, %v2428_v1 }
 0x3b6   :  { %2243 = vmatprep.subr.bf16.mxu0 %v2426_v0 }
 0x3b9   :  { %2245 = vmatpush3.bf16.msra.mxu0 %v2471_v8 }
 0x3ba   :  { %2252 = vmatprep.subr.bf16.mxu0 %v2426_v0 }
 0x487   :  { %v418_v38 = vpop.f32.mrb[4].mxu0 }
 0x488   :  { %v423_v39 = vrot.slane %v418_v38, 3  ;;  %v2007_v40 = vpop.f32.mrb[5].mxu0 }
 0x489   :  { %v1159_v40 = vld [vmem:[#allocation2 + $0x20] sm:$0xff] }
 0x48a   :  { %v425_v41 = vadd.f32 %v423_v39, %v2467_v7 }
 0x48c   :  { %2361 = vtanh.f32 %v425_v41  ;;  %v1160_v41 = vld [vmem:[#allocation2 + $0x28] sm:$0xff] }
 0x48d   :  { %2363 = vtanh.f32 %v2527_v42 }
 0x496   :  { %v2362_v43 = vpop.eup %2361 }
 0x497   :  { %v428_v44 = vrot.slane %v2362_v43, 5  ;;  %v594_v45 = vsel %vm593_vm6, %v592_v37, %v2362_v43  ;;  %v2364_v46 = vpop.eup %2363  ;;  %v1161_v43 = vld [vmem:[#allocation2 + $0x30] sm:$0xff] }
 0x499   :  { %2017 = vmatmul.mubr.msk.f32.vlgmr.msra.gmra.mrb[4].mxu1 %vm32_vm1, %v428_v44  ;;  %v2288_v44 = vpack.c.bf16 %v1160_v41, %v1159_v40  ;;  %v1443_v40 = vld [vmem:[#allocation2 + $0x128] sm:$0xf]  ;;  %v1817_v41 = vld [vmem:[#allocation2 + $0x130] ss:$0 sm:$0xff] }
 0x49a   :  { %2248 = vmatpush3.bf16.msra.mxu1 %v2462_v5  ;;  %2038 = vmatprep.mubr.msk.f32.mxu1 %vm2427_vm0, %v2428_v1 }
 0x49b   :  { %2249 = vmatprep.subr.bf16.mxu1 %v2426_v0 }
 0x49e   :  { %2251 = vmatpush3.bf16.msra.mxu1 %v2471_v8 }
 0x49f   :  { %2258 = vmatprep.subr.bf16.mxu1 %v2426_v0 }
 0x4a1   :  { %2039 = vmatmul.mubr.msk.f32.vlgmr.msra.gmra.mrb[6].mxu1 %vm32_vm1, %v2364_v46 }
 0x4a2   :  { %2260 = vmatpush3.bf16.msra.mxu1 %v2462_v5  ;;  %2060 = vmatprep.mubr.msk.f32.mxu1 %vm2427_vm0, %v2428_v1 }
 0x4a3   :  { %2261 = vmatprep.subr.bf16.mxu1 %v2426_v0 }
 0x4a6   :  { %2263 = vmatpush3.bf16.msra.mxu1 %v2471_v8 }
 0x4a7   :  { %2270 = vmatprep.subr.bf16.mxu1 %v2426_v0 }
 0x56c   :  { %v497_v47 = vpop.f32.mrb[4].mxu1 }
 0x56d   :  { %v502_v48 = vrot.slane %v497_v47, 2  ;;  %v2018_v49 = vpop.f32.mrb[5].mxu1  ;;  %v1249_v47 = vld [vmem:[#allocation2 + $0x40] sm:$0xff] }
 0x56e   :  { %v1251_v49 = vld [vmem:[#allocation2 + $0x50] sm:$0xff] }
 0x56f   :  { %v504_v50 = vadd.f32 %v502_v48, %v2467_v7  ;;  %v1250_v48 = vld [vmem:[#allocation2 + $0x48] sm:$0xff] }
 0x571   :  { %2365 = vtanh.f32 %v504_v50  ;;  %v2297_v50 = vpack.c.bf16 %v1250_v48, %v1249_v47  ;;  %v1524_v48 = vld [vmem:[#allocation2 + $0x138] sm:$0xff] }
 0x574   :  { %v669_v51 = vpop.f32.mrb[6].mxu1 }
 0x575   :  { %v674_v52 = vrot.slane %v669_v51, 7  ;;  %v2040_v53 = vpop.f32.mrb[7].mxu1  ;;  %v1252_v51 = vld [vmem:[#allocation2 + $0x58] sm:$0xff] }
 0x576   :  { %v1253_v53 = vld [vmem:[#allocation2 + $0x60] sm:$0xff] }
 0x577   :  { %v676_v54 = vadd.f32 %v674_v52, %v2527_v42  ;;  %v2300_v52 = vpack.c.bf16 %v1252_v51, %v1251_v49  ;;  %v1525_v49 = vld [vmem:[#allocation2 + $0x140] sm:$0xff]  ;;  %v1526_v51 = vld [vmem:[#allocation2 + $0x148] sm:$0xf] }
 0x579   :  { %2367 = vtanh.f32 %v676_v54  ;;  %v1254_v54 = vld [vmem:[#allocation2 + $0x68] sm:$0xff] }
 0x57b   :  { %v2366_v55 = vpop.eup %2365 }
 0x57c   :  { %v507_v56 = vrot.slane %v2366_v55, 6  ;;  %v596_v57 = vsel %vm595_vm7, %v594_v45, %v2366_v55  ;;  %v1162_v45 = vld [vmem:[#allocation2 + $0x38] sm:$0xff]  ;;  %v2303_v55 = vpack.c.bf16 %v1254_v54, %v1253_v53 }
 0x57e   :  { %2028 = vmatmul.mubr.msk.f32.vlgmr.msra.gmra.mrb[6].mxu0 %vm32_vm1, %v507_v56 }
 0x57f   :  { %2254 = vmatpush3.bf16.msra.mxu0 %v2462_v5  ;;  %2049 = vmatprep.mubr.msk.f32.mxu0 %vm2427_vm0, %v2428_v1 }
 0x580   :  { %2255 = vmatprep.subr.bf16.mxu0 %v2426_v0 }
 0x583   :  { %v2368_v58 = vpop.eup %2367  ;;  %2257 = vmatpush3.bf16.msra.mxu0 %v2471_v8 }
 0x584   :  { %v679_v59 = vrot.slane %v2368_v58, 1  ;;  %2264 = vmatprep.subr.bf16.mxu0 %v2426_v0  ;;  %v1152_v12 = vsel %vm585_vm2, %v2364_v46, %v2368_v58  ;;  %v2292_v46 = vpack.c.bf16 %v1162_v45, %v1161_v43 }
 0x586   :  { %2050 = vmatmul.mubr.msk.f32.vlgmr.msra.gmra.mrb[8].mxu0 %vm32_vm1, %v679_v59 }
 0x587   :  { %2266 = vmatpush3.bf16.msra.mxu0 %v2462_v5  ;;  %2071 = vmatprep.mubr.msk.f32.mxu0 %vm2427_vm0, %v2428_v1 }
 0x588   :  { %2267 = vmatprep.subr.bf16.mxu0 %v2426_v0 }
 0x58b   :  { %2269 = vmatpush3.bf16.msra.mxu0 %v2471_v8 }
 0x58c   :  { %2276 = vmatprep.subr.bf16.mxu0 %v2426_v0 }
 0x651   :  { %v576_v60 = vpop.f32.mrb[6].mxu0 }
 0x652   :  { %v581_v61 = vrot.slane %v576_v60, 1  ;;  %v2029_v62 = vpop.f32.mrb[7].mxu0 }
 0x653   :  { %v1255_v62 = vld [vmem:[#allocation2 + $0x70] sm:$0xff] }
 0x654   :  { %v583_v63 = vadd.f32 %v581_v61, %v2467_v7 }
 0x656   :  { %2369 = vtanh.f32 %v583_v63  ;;  %v1256_v63 = vld [vmem:[#allocation2 + $0x78] sm:$0xff] }
 0x659   :  { %v748_v2 = vpop.f32.mrb[8].mxu0 }
 0x65a   :  { %v753_v3 = vrot.slane %v748_v2, 6  ;;  %v2051_v4 = vpop.f32.mrb[9].mxu0  ;;  %v2306_v2 = vpack.c.bf16 %v1256_v63, %v1255_v62  ;;  %v1694_v62 = vld [vmem:[#allocation2 + $0x160] sm:$0x1f] }
 0x65b   :  { %v1258_v4 = vld [vmem:[#allocation2 + $0x88] sm:$0xff] }
 0x65c   :  { %v755_v6 = vadd.f32 %v753_v3, %v2527_v42  ;;  %v1257_v3 = vld [vmem:[#allocation2 + $0x80] sm:$0xff] }
 0x65e   :  { %2371 = vtanh.f32 %v755_v6  ;;  %v2309_v6 = vpack.c.bf16 %v1258_v4, %v1257_v3 }
 0x660   :  { %v2370_v9 = vpop.eup %2369 }
 0x661   :  { %v598_v10 = vsel %vm597_vm8, %v596_v57, %v2370_v9  ;;  %v1259_v9 = vld [vmem:[#allocation2 + $0x90] sm:$0xff] }
 0x668   :  { %v2372_v11 = vpop.eup %2371 }
 0x669   :  { %v758_v13 = vrot.slane %v2372_v11, 2  ;;  %v1153_v14 = vsel %vm587_vm3, %v1152_v12, %v2372_v11  ;;  %v1342_v12 = vld [vmem:[#allocation2 + $0xb0] sm:$0xff] }
 0x66b   :  { %2061 = vmatmul.mubr.msk.f32.vlgmr.msra.gmra.mrb[8].mxu1 %vm32_vm1, %v758_v13  ;;  %v1343_v13 = vld [vmem:[#allocation2 + $0xb8] sm:$0xff] }
 0x66c   :  { %2272 = vmatpush3.bf16.msra.mxu1 %v2462_v5  ;;  %2082 = vmatprep.mubr.msk.f32.mxu1 %vm2427_vm0, %v2428_v1 }
 0x66d   :  { %2273 = vmatprep.subr.bf16.mxu1 %v2426_v0 }
 0x670   :  { %2275 = vmatpush3.bf16.msra.mxu1 %v2471_v8 }
 0x671   :  { %2282 = vmatprep.subr.bf16.mxu1 %v2426_v0 }
 0x73e   :  { %v827_v7 = vpop.f32.mrb[8].mxu1 }
 0x73f   :  { %v832_v15 = vrot.slane %v827_v7, 5  ;;  %v2062_v16 = vpop.f32.mrb[9].mxu1  ;;  %v2314_v7 = vpack.c.bf16 %v1343_v13, %v1342_v12 }
 0x741   :  { %v834_v17 = vadd.f32 %v832_v15, %v2527_v42  ;;  %v1345_v15 = vld [vmem:[#allocation2 + $0xc8] sm:$0xff] }
 0x743   :  { %2373 = vtanh.f32 %v834_v17  ;;  %v1346_v17 = vld [vmem:[#allocation2 + $0xd0] sm:$0xff] }
 0x74d   :  { %v2374_v18 = vpop.eup %2373 }
 0x74e   :  { %v837_v19 = vrot.slane %v2374_v18, 3  ;;  %v1154_v20 = vsel %vm589_vm4, %v1153_v14, %v2374_v18  ;;  %v1344_v14 = vld [vmem:[#allocation2 + $0xc0] sm:$0xff]  ;;  %v1347_v18 = vld [vmem:[#allocation2 + $0xd8] sm:$0xff] }
 0x74f   :  { %v2318_v16 = vpack.c.bf16 %v1345_v15, %v1344_v14 }
 0x750   :  { %2072 = vmatmul.mubr.msk.f32.vlgmr.msra.gmra.mrb[10].mxu0 %vm32_vm1, %v837_v19  ;;  %v2322_v19 = vpack.c.bf16 %v1347_v18, %v1346_v17 }
 0x751   :  { %2278 = vmatpush3.bf16.msra.mxu0 %v2462_v5  ;;  %2093 = vmatprep.mubr.msk.f32.mxu0 %vm2427_vm0, %v2428_v1 }
 0x752   :  { %2279 = vmatprep.subr.bf16.mxu0 %v2426_v0 }
 0x755   :  { %2281 = vmatpush3.bf16.msra.mxu0 %v2471_v8 }
 0x756   :  { %2289 = vmatprep.subr.bf16.mxu0 %v2288_v44 }
 0x823   :  { %v906_v21 = vpop.f32.mrb[10].mxu0 }
 0x824   :  { %v911_v22 = vrot.slane %v906_v21, 4  ;;  %v2073_v23 = vpop.f32.mrb[11].mxu0 }
 0x826   :  { %v913_v24 = vadd.f32 %v911_v22, %v2527_v42 }
 0x828   :  { %2375 = vtanh.f32 %v913_v24 }
 0x832   :  { %v2376_v25 = vpop.eup %2375 }
 0x833   :  { %v916_v26 = vrot.slane %v2376_v25, 4  ;;  %v1155_v27 = vsel %vm591_vm5, %v1154_v20, %v2376_v25  ;;  %v1812_v20 = vld [vmem:[#allocation2 + $0xa8] ss:$0 sm:$0xff]  ;;  %v1348_v25 = vld [vmem:[#allocation2 + $0xe0] sm:$0xff] }
 0x835   :  { %2083 = vmatmul.mubr.msk.f32.vlgmr.msra.gmra.mrb[10].mxu1 %vm32_vm1, %v916_v26  ;;  %v1349_v26 = vld [vmem:[#allocation2 + $0xe8] sm:$0xff] }
 0x836   :  { %2284 = vmatpush3.bf16.msra.mxu1 %v2462_v5  ;;  %2104 = vmatprep.mubr.msk.f32.mxu1 %vm2427_vm0, %v2428_v1 }
 0x837   :  { %2285 = vmatprep.subr.bf16.mxu1 %v2426_v0 }
 0x83a   :  { %2287 = vmatpush3.bf16.msra.mxu1 %v2471_v8 }
 0x83b   :  { %2296 = vmatprep.subr.bf16.mxu1 %v2426_v0 }
 0x908   :  { %v985_v28 = vpop.f32.mrb[10].mxu1 }
 0x909   :  { %v990_v29 = vrot.slane %v985_v28, 3  ;;  %v2084_v30 = vpop.f32.mrb[11].mxu1  ;;  %v1350_v28 = vld [vmem:[#allocation2 + $0xf0] sm:$0xff] }
 0x90b   :  { %v992_v31 = vadd.f32 %v990_v29, %v2527_v42  ;;  %v1351_v29 = vld [vmem:[#allocation2 + $0xf8] sm:$0xff] }
 0x90c   :  { %v2330_v30 = vpack.c.bf16 %v1351_v29, %v1350_v28 }
 0x90d   :  { %2377 = vtanh.f32 %v992_v31  ;;  %v1352_v31 = vld [vmem:[#allocation2 + $0x100] sm:$0xff] }
 0x917   :  { %v2378_v32 = vpop.eup %2377 }
 0x918   :  { %v995_v33 = vrot.slane %v2378_v32, 5  ;;  %v1156_v34 = vsel %vm593_vm6, %v1155_v27, %v2378_v32  ;;  %v2326_v27 = vpack.c.bf16 %v1349_v26, %v1348_v25  ;;  %v1353_v32 = vld [vmem:[#allocation2 + $0x108] sm:$0xff] }
 0x91a   :  { %2094 = vmatmul.mubr.msk.f32.vlgmr.msra.gmra.mrb[12].mxu0 %vm32_vm1, %v995_v33  ;;  %v2334_v33 = vpack.c.bf16 %v1353_v32, %v1352_v31 }
 0x91b   :  { %2115 = vmatprep.mubr.msk.f32.mxu0 %vm32_vm1, %v598_v10  ;;  %2291 = vmatpush3.bf16.msra.mxu0 %v2288_v44  ;;  %v1260_v10 = vld [vmem:[#allocation2 + $0x98] sm:$0xff] }
 0x91c   :  { %2293 = vmatprep.subr.bf16.mxu0 %v2292_v46  ;;  %v2312_v11 = vpack.c.bf16 %v1260_v10, %v1259_v9 }
 0x91f   :  { %2295 = vmatpush3.bf16.msra.mxu0 %v2292_v46 }
 0x920   :  { %2315 = vmatprep.subr.bf16.mxu0 %v2314_v7 }
 0x9ed   :  { %v1064_v5 = vpop.f32.mrb[12].mxu0 }
 0x9ee   :  { %v1069_v35 = vrot.slane %v1064_v5, 2  ;;  %v2095_v36 = vpop.f32.mrb[13].mxu0 }
 0x9f0   :  { %v1071_v8 = vadd.f32 %v1069_v35, %v2527_v42 }
 0x9f2   :  { %2379 = vtanh.f32 %v1071_v8 }
 0x9fc   :  { %v2380_v37 = vpop.eup %2379 }
 0x9fd   :  { %v1074_v38 = vrot.slane %v2380_v37, 6  ;;  %v1157_v39 = vsel %vm595_vm7, %v1156_v34, %v2380_v37  ;;  %v1354_v34 = vld [vmem:[#allocation2 + $0x110] sm:$0xf]  ;;  %v1441_v37 = vld [vmem:[#allocation2 + $0x118] sm:$0xff] }
 0x9ff   :  { %2105 = vmatmul.mubr.msk.f32.vlgmr.msra.gmra.mrb[12].mxu1 %vm32_vm1, %v1074_v38  ;;  %v1442_v38 = vld [vmem:[#allocation2 + $0x120] sm:$0xff] }
 0xa00   :  { %2144 = vmatprep.mubr.msk.f32.mxu1 %vm2427_vm0, %v2428_v1  ;;  %2298 = vmatpush3.bf16.msra.mxu1 %v2297_v50  ;;  %v2341_v50 = vpack.c.bf16 %v1525_v49, %v1524_v48 }
 0xa01   :  { %2299 = vmatprep.subr.bf16.mxu1 %v2426_v0 }
 0xa04   :  { %2301 = vmatpush3.bf16.msra.mxu1 %v2300_v52 }
 0xa05   :  { %2302 = vmatprep.subr.bf16.mxu1 %v2426_v0 }
 0xa08   :  { %2304 = vmatpush3.bf16.msra.mxu1 %v2303_v55  ;;  %v1613_v55 = vld [vmem:[#allocation2 + $0x150] sm:$0x1f] }
 0xa09   :  { %2305 = vmatprep.subr.bf16.mxu1 %v2426_v0 }
 0xa0c   :  { %2307 = vmatpush3.bf16.msra.mxu1 %v2306_v2 }
 0xa0d   :  { %2308 = vmatprep.subr.bf16.mxu1 %v2426_v0 }
 0xa10   :  { %2310 = vmatpush3.bf16.msra.mxu1 %v2309_v6  ;;  %v1829_v6 = vld [vmem:[#allocation2 + $0x170] ss:$0 sm:$0xff] }
 0xa11   :  { %2311 = vmatprep.subr.bf16.mxu1 %v2426_v0 }
 0xa14   :  { %2313 = vmatpush3.bf16.msra.mxu1 %v2312_v11 }
 0xa15   :  { %2142 = vmatprep.subr.mxu1 %v2428_v1 }
 0xad2   :  { %v1143_v56 = vpop.f32.mrb[12].mxu1 }
 0xad3   :  { %v1148_v57 = vrot.slane %v1143_v56, 1  ;;  %v2106_v58 = vpop.f32.mrb[13].mxu1  ;;  %v1823_v56 = vld [vmem:[#allocation2 + $0x158] ss:$0 sm:$0xff] }
 0xad5   :  { %v1150_v59 = vadd.f32 %v1148_v57, %v2527_v42  ;;  %v1261_v42 = vld [vmem:[#allocation2 + $0xa0] sm:$0xf] }
 0xad6   :  { %2143 = vmatpush3.msk.msra.mxu1 %vm591_vm5, %v1261_v42  ;;  %v1833_v42 = vld [vmem:[#allocation2 + $0x168] ss:$0 sm:$0xff] }
 0xad7   :  { %2381 = vtanh.f32 %v1150_v59  ;;  %2338 = vmatprep.subr.bf16.mxu1 %v2426_v0 }
 0xae1   :  { %v2382_v60 = vpop.eup %2381 }
 0xae2   :  { %v1158_v61 = vsel %vm597_vm8, %v1157_v39, %v2382_v60  ;;  %v2339_v39 = vpack.c.bf16 %v1442_v38, %v1441_v37 }
 0xae3   :  { %2116 = vmatmul.mubr.msk.f32.vlgmr.msra.gmra.mrb[14].mxu0 %vm32_vm1, %v1158_v61 }
 0xae4   :  { %2317 = vmatpush3.bf16.msra.mxu0 %v2314_v7 }
 0xae5   :  { %2319 = vmatprep.subr.bf16.mxu0 %v2318_v16 }
 0xae8   :  { %2321 = vmatpush3.bf16.msra.mxu0 %v2318_v16 }
 0xae9   :  { %2323 = vmatprep.subr.bf16.mxu0 %v2322_v19 }
 0xaec   :  { %2325 = vmatpush3.bf16.msra.mxu0 %v2322_v19 }
 0xaed   :  { %2327 = vmatprep.subr.bf16.mxu0 %v2326_v27 }
 0xaf0   :  { %2329 = vmatpush3.bf16.msra.mxu0 %v2326_v27 }
 0xaf1   :  { %2331 = vmatprep.subr.bf16.mxu0 %v2330_v30 }
 0xaf4   :  { %2333 = vmatpush3.bf16.msra.mxu0 %v2330_v30 }
 0xaf5   :  { %2335 = vmatprep.subr.bf16.mxu0 %v2334_v33 }
 0xaf8   :  { %2337 = vmatpush3.bf16.msra.mxu0 %v2334_v33 }
 0xaf9   :  { %2171 = vmatprep.subr.msk.mxu0 %vm591_vm5, %v1354_v34 }
 0xafc   :  { %2172 = vmatpush3.msk.msra.mxu0 %vm591_vm5, %v1354_v34 }
 0xafd   :  { %2194 = vmatprep.subr.mxu0 %v2428_v1 }
 0xbb6   :  { %v2117_v21 = vpop.f32.mrb[14].mxu0 }
 0xbb7   :  { %v1246_v22 = vadd.f32 %v2117_v21, %v1812_v20  ;;  %v1240_v23 = vpop.f32.mrb[15].mxu0 }
 0xbb8   :  { %v1241_v24 = vadd.f32 %v1812_v20, %v1240_v23 }
 0xbba   :  { %2383 = vtanh.f32 %v1241_v24 }
 0xbc4   :  { %v2384_v0 = vpop.eup %2383 }
 0xbc5   :  { %2145 = vmatmul.mubr.msk.f32.vlgmr.msra.gmra.mrb[14].mxu1 %vm1263_vm9, %v2384_v0  ;;  %2173 = vmatprep.mubr.msk.f32.mxu0 %vm1263_vm9, %v2384_v0 }
 0xbc6   :  { %2182 = vmatprep.mubr.msk.f32.mxu1 %vm2427_vm0, %v2428_v1  ;;  %2340 = vmatpush3.bf16.msra.mxu1 %v2339_v39 }
 0xbc7   :  { %2180 = vmatprep.subr.mxu1 %v2428_v1 }
 0xbca   :  { %2181 = vmatpush3.msk.msra.mxu1 %vm591_vm5, %v1443_v40 }
 0xbcb   :  { %2342 = vmatprep.subr.bf16.mxu1 %v2341_v50 }
 0xc98   :  { %v1336_v5 = vpop.f32.mrb[14].mxu1 }
 0xc99   :  { %v1340_v35 = vadd.f32 %v1336_v5, %v1246_v22  ;;  %v2146_v36 = vpop.f32.mrb[15].mxu1 }
 0xc9b   :  { %2385 = vtanh.f32 %v1340_v35 }
 0xca5   :  { %v2386_v8 = vpop.eup %2385 }
 0xca6   :  { %2174 = vmatmul.mubr.msk.f32.vlgmr.msra.gmra.mrb[16].mxu0 %vm1263_vm9, %v2386_v8 }
 0xca7   :  { %2196 = vmatprep.mubr.msk.f32.mxu0 %vm2427_vm0, %v2428_v1  ;;  %2195 = vmatpush3.msk.msra.mxu0 %vm593_vm6, %v1613_v55 }
 0xca8   :  { %2199 = vmatprep.subr.msk.mxu0 %vm593_vm6, %v1694_v62 }
 0xd79   :  { %v2175_v43 = vpop.f32.mrb[16].mxu0 }
 0xd7a   :  { %v1438_v44 = vadd.f32 %v2175_v43, %v1817_v41  ;;  %v1432_v45 = vpop.f32.mrb[17].mxu0 }
 0xd7b   :  { %v1433_v46 = vadd.f32 %v1817_v41, %v1432_v45 }
 0xd7d   :  { %2387 = vtanh.f32 %v1433_v46 }
 0xd87   :  { %v2388_v47 = vpop.eup %2387 }
 0xd88   :  { %2183 = vmatmul.mubr.msk.f32.vlgmr.msra.gmra.mrb[16].mxu1 %vm1445_vm10, %v2388_v47 }
 0xd89   :  { %2191 = vmatprep.mubr.msk.f32.mxu1 %vm1445_vm10, %v2388_v47  ;;  %2344 = vmatpush3.bf16.msra.mxu1 %v2341_v50 }
 0xd8a   :  { %2189 = vmatprep.subr.msk.mxu1 %vm591_vm5, %v1526_v51 }
 0xd8d   :  { %2190 = vmatpush3.msk.msra.mxu1 %vm591_vm5, %v1526_v51 }
 0xe5b   :  { %v1518_v1 = vpop.f32.mrb[16].mxu1 }
 0xe5c   :  { %v1522_v52 = vadd.f32 %v1518_v1, %v1438_v44  ;;  %v2184_v53 = vpop.f32.mrb[17].mxu1 }
 0xe5e   :  { %2389 = vtanh.f32 %v1522_v52 }
 0xe68   :  { %v2390_v54 = vpop.eup %2389 }
 0xe69   :  { %2192 = vmatmul.mubr.msk.f32.vlgmr.msra.gmra.mrb[18].mxu1 %vm1445_vm10, %v2390_v54 }
 0xf3c   :  { %v2193_v57 = vpop.f32.mrb[18].mxu1 }
 0xf3d   :  { %v1610_v58 = vadd.f32 %v2193_v57, %v1823_v56  ;;  %v1604_v59 = vpop.f32.mrb[19].mxu1 }
 0xf3e   :  { %v1605_v60 = vadd.f32 %v1823_v56, %v1604_v59 }
 0xf40   :  { %2391 = vtanh.f32 %v1605_v60 }
 0xf4a   :  { %v2392_v61 = vpop.eup %2391 }
 0xf4b   :  { %2197 = vmatmul.mubr.msk.f32.vlgmr.msra.gmra.mrb[18].mxu0 %vm1615_vm11, %v2392_v61 }
 0xf4c   :  { %2201 = vmatprep.mubr.msk.f32.mxu0 %vm1615_vm11, %v2392_v61  ;;  %2200 = vmatpush3.msk.msra.mxu0 %vm593_vm6, %v1694_v62 }
0x101e   :  { %v1688_v63 = vpop.f32.mrb[18].mxu0 }
0x101f   :  { %v1692_v2 = vadd.f32 %v1688_v63, %v1610_v58  ;;  %v2198_v3 = vpop.f32.mrb[19].mxu0 }
0x1021   :  { %2393 = vtanh.f32 %v1692_v2 }
0x102b   :  { %v2394_v4 = vpop.eup %2393 }
0x102c   :  { %2202 = vmatmul.mubr.msk.f32.vlgmr.msra.gmra.mrb[20].mxu0 %vm1615_vm11, %v2394_v4 }
0x10ff   :  { %v2203_v9 = vpop.f32.mrb[20].mxu0 }
0x1100   :  { %v1772_v10 = vpop.f32.mrb[21].mxu0  ;;  %v1778_v13 = vadd.f32 %v2203_v9, %v1829_v6 }
0x1101   :  { %v1773_v11 = vadd.f32 %v1829_v6, %v1772_v10 }
0x1103   :  { %2395 = vtanh.f32 %v1773_v11 }
0x110d   :  { %v2396_v12 = vpop.eup %2395 }
0x110e   :  { %v1787_v14 = vmul.f32 %v2396_v12, %v1833_v42  ;;  %1791 = vst.msk [vmem:[%s2639_s2] sm:$0xff] %vm1790_vm12, %v2396_v12 }
0x1110   :  { %v1788_v7 = vadd.f32 %v1787_v14, %v1778_v13 }
0x1112   :  { %2397 = vtanh.f32 %v1788_v7 }
0x111c   :  { %v2398_v15 = vpop.eup %2397 }
0x111d   :  { %1792 = vst.msk [vmem:[%s2639_s2 + $0x8] sm:$0xff] %vm1790_vm12, %v2398_v15 }
0x111e   :  { %1797 = vsyncpa [#allocation3], 1 }

</bundles_post_ra>
